<compile_context>
chip_gen: v6e
topology: v6e:2x2x1
jax: 0.10.0
libtpu: 0.0.40
codegen_flags: <defaults>
</compile_context>

<pallas_src>
import functools

import jax
import jax.numpy as jnp
from jax import lax
from jax.experimental import pallas as pl
from jax.experimental.pallas import tpu as pltpu


def _round_up(n, m):
    return ((n + m - 1) // m) * m


def _pad_axis(a, axis, multiple):
    size = a.shape[axis]
    pad = (-size) % multiple
    if pad == 0:
        return a
    widths = [(0, 0)] * a.ndim
    widths[axis] = (0, pad)
    return jnp.pad(a, widths)


def _vmem_limit_bytes():
    """Generation-aware VMEM budget (conservative fallback = v7x's 64 MiB/TC)."""
    phys = 64 * 1024 * 1024
    try:
        phys = int(pltpu.get_tpu_info().vmem_capacity_bytes)
    except Exception:
        pass
    # leave headroom for compiler scratch; cap well below the largest physical VMEM
    return min(int(phys * 3 // 4), 100 * 1024 * 1024)


def _pick_tiles(B, H, Fpad, p_bytes, vmem_limit, tb_max, th_max):
    tb = min(tb_max, _round_up(B, 8))
    # Guarantee >= 2 B-tiles when the batch allows it, so the "parallel" B axis can be
    # sharded across both TensorCores on v7x (negligible cost on single-TC v5e/v6e).
    if B > 8 and _round_up(B, tb) // tb < 2:
        tb = _round_up((B + 1) // 2, 8)
    th = min(th_max, _round_up(H, 128))

    def footprint(tb_, th_):
        return (2 * tb_ * Fpad * 4            # x tile (f32), double-buffered
                + 2 * th_ * Fpad * p_bytes    # prototype tile, double-buffered
                + 2 * 2 * th_ * 4             # weight row + ||p||^2 row, double-buffered
                + 2 * tb_ * 4                 # output tile
                + tb_ * 128 * 4 + tb_ * 4)    # accumulator + ||x||^2 scratch

    budget = int(vmem_limit * 0.7)
    while footprint(tb, th) > budget and th > 128:
        th = max(128, _round_up(th // 2, 128))
    while footprint(tb, th) > budget and tb > 8:
        tb = max(8, _round_up(tb // 2, 8))
    return tb, th


def _rbf_kernel(x_ref, p_ref, psq_ref, w_ref, o_ref, acc_ref, xsq_ref, *,
                inv_two_sigma_sq, mxu_dtype):
    """Grid point (i, j): B-tile i vs. H-tile j.

    x_ref  : [tb, F]   f32   -- invariant along j
    p_ref  : [th, F]   f32 or bf16 (prototype stream)
    psq_ref: [1, th]   f32   -- precomputed ||p||^2, lane-dense
    w_ref  : [1, th]   f32   -- lane-dense linear-head weight tile
    o_ref  : [tb, 1]   f32   -- same block for all j (resident target)
    acc_ref: [tb, 128] VMEM f32 scratch (lane-dense partial linear-head sums)
    xsq_ref: [tb, 1]   VMEM f32 scratch (||x||^2, hoisted out of the H loop)
    """
    j = pl.program_id(1)

    @pl.when(j == 0)
    def _init():
        acc_ref[...] = jnp.zeros_like(acc_ref)
        x0 = x_ref[...]
        xsq_ref[...] = jnp.sum(x0 * x0, axis=-1, keepdims=True)      # [tb, 1], exact f32

    x = x_ref[...]                                                   # [tb, F]
    p = p_ref[...]                                                   # [th, F]
    w = w_ref[...]                                                   # [1, th]
    p_sq = psq_ref[...]                                              # [1, th]

    # ||x - p||^2 = ||x||^2 + ||p||^2 - 2 <x, p>  (cross term on the MXU, f32 accumulate)
    xp = lax.dot_general(x.astype(mxu_dtype), p.astype(mxu_dtype),
                         (((1,), (1,)), ((), ())),
                         preferred_element_type=jnp.float32)         # [tb, th]

    sq_dist = jnp.maximum(xsq_ref[...] + p_sq - 2.0 * xp, 0.0)       # [tb, th]
    dist = jnp.sqrt(sq_dist)                                         # reference takes .pow(0.5)
    k = jnp.exp(dist * (-inv_two_sigma_sq))                          # [tb, th]

    # Linear head: lane-dense VPU adds into a [tb, 128] accumulator; the single
    # cross-lane reduce happens only in the finalize step.
    kw = k * w                                                       # [tb, th]
    acc = acc_ref[...]
    for s in range(kw.shape[1] // 128):                              # static unroll
        acc = acc + kw[:, s * 128:(s + 1) * 128]
    acc_ref[...] = acc

    @pl.when(j == pl.num_programs(1) - 1)
    def _finalize():
        o_ref[...] = jnp.sum(acc_ref[...], axis=-1,
                             keepdims=True).astype(o_ref.dtype)


def rbf_forward(x, prototypes, weight, sigma, *, use_bf16_mxu=True,
                tb_max=512, th_max=2048):
    """Pallas RBF forward.

    x          : [B, F]  f32
    prototypes : [H, F]  f32
    weight     : [1, H] (torch Linear layout), [H, 1] or [H]
    returns    : [B, 1]  f32
    """
    B, F = x.shape
    H, Fp = prototypes.shape
    assert F == Fp, "feature dims must match"
    assert weight.size == H, "linear-head weight must have hidden_dim elements"

    inv_two_sigma_sq = 1.0 / (2.0 * float(sigma) ** 2)
    mxu_dtype = jnp.bfloat16 if use_bf16_mxu else jnp.float32
    p_bytes = 2 if use_bf16_mxu else 4

    # --- input preparation / padding --------------------------------------------------
    # Zero-pad features to a multiple of 128 (zeros contribute nothing to distances).
    xf = _pad_axis(jnp.asarray(x, jnp.float32), 1, 128)
    pf32 = _pad_axis(jnp.asarray(prototypes, jnp.float32), 1, 128)
    Fpad = xf.shape[1]

    # ||p||^2 precomputed once (exact f32, before any bf16 cast), lane-dense [1, H].
    p_sq_row = jnp.sum(pf32 * pf32, axis=-1).reshape(1, H)
    # Lane-dense linear-head weight row [1, H].
    w_row = jnp.asarray(weight, jnp.float32).reshape(1, H)

    vmem_limit = _vmem_limit_bytes()
    tb, th = _pick_tiles(B, H, Fpad, p_bytes, vmem_limit, tb_max, th_max)

    # Pad B/H up to whole tiles. Padded prototypes are all-zero and get zero weight
    # (zero contribution); padded batch rows are sliced off at the end.
    xf = _pad_axis(xf, 0, tb)
    pf32 = _pad_axis(pf32, 0, th)
    p_sq_row = _pad_axis(p_sq_row, 1, th)
    w_row = _pad_axis(w_row, 1, th)
    Bp = xf.shape[0]
    Hp = pf32.shape[0]

    # Stream the dominant operand (prototypes) in bf16 on the fast path: halves HBM
    # traffic and the p-tile VMEM footprint. x stays f32 (tiny, invariant along j).
    pf = pf32.astype(mxu_dtype) if use_bf16_mxu else pf32

    grid = (Bp // tb, Hp // th)
    n_b_tiles = grid[0]

    kernel = functools.partial(_rbf_kernel,
                               inv_two_sigma_sq=inv_two_sigma_sq,
                               mxu_dtype=mxu_dtype)

    cost = pl.CostEstimate(
        flops=2 * Bp * Hp * Fpad + 8 * Bp * Hp,
        transcendentals=2 * Bp * Hp,                       # sqrt + exp per (b, h)
        bytes_accessed=(n_b_tiles * Hp * Fpad * p_bytes    # prototypes, re-streamed per B-tile
                        + Bp * Fpad * 4                    # x (once per B-tile)
                        + n_b_tiles * Hp * 4 * 2           # weight + ||p||^2 rows per B-tile
                        + Bp * 4),                         # output
    )

    out = pl.pallas_call(
        kernel,
        out_shape=jax.ShapeDtypeStruct((Bp, 1), jnp.float32),
        grid=grid,
        in_specs=[
            pl.BlockSpec((tb, Fpad), lambda i, j: (i, 0)),   # x tile (invariant along j)
            pl.BlockSpec((th, Fpad), lambda i, j: (j, 0)),   # prototype tile (bf16 fast path)
            pl.BlockSpec((1, th), lambda i, j: (0, j)),      # precomputed ||p||^2 row
            pl.BlockSpec((1, th), lambda i, j: (0, j)),      # lane-dense weight row
        ],
        out_specs=pl.BlockSpec((tb, 1), lambda i, j: (i, 0)),  # resident across j
        scratch_shapes=[
            pltpu.VMEM((tb, 128), jnp.float32),   # lane-dense linear-head accumulator
            pltpu.VMEM((tb, 1), jnp.float32),     # hoisted ||x||^2
        ],
        compiler_params=pltpu.CompilerParams(
            dimension_semantics=("parallel", "arbitrary"),
            vmem_limit_bytes=vmem_limit,
        ),
        cost_estimate=cost,
    )(xf, pf, p_sq_row, w_row)

    return out[:B]


def rbf_reference(x, prototypes, weight, sigma):
    """Pure-JAX reference mirroring the PyTorch forward exactly."""
    diff = x[:, None, :] - prototypes[None, :, :]          # [B, H, F]
    two_norm = jnp.sqrt(jnp.sum(diff * diff, axis=-1))     # [B, H]
    k = jnp.exp(-two_norm / (2.0 * sigma ** 2))            # [B, H]
    w_col = jnp.asarray(weight, jnp.float32).reshape(-1, 1)
    return k @ w_col                                       # [B, 1]


if __name__ == "__main__":
    key = jax.random.PRNGKey(0)
    k_x, k_proto, k_w = jax.random.split(key, 3)

    batch_size = 8
    n_features = 16
    hidden_dim = 32   # number of prototypes ("kernel units")
    sigma = 1.5

    x = jax.random.normal(k_x, (batch_size, n_features), dtype=jnp.float32)
    prototypes = jax.random.normal(k_proto, (hidden_dim, n_features), dtype=jnp.float32)
    # torch.nn.Linear(hidden_dim, 1, bias=False) weight layout: [1, hidden_dim],
    # default init U(-1/sqrt(fan_in), 1/sqrt(fan_in)).
    bound = 1.0 / jnp.sqrt(float(hidden_dim))
    weight = jax.random.uniform(k_w, (1, hidden_dim), dtype=jnp.float32,
                                minval=-bound, maxval=bound)

    ref = rbf_reference(x, prototypes, weight, sigma)

    # Exact-parity path (f32 MXU): must match the reference to 1e-5.
    out_f32 = rbf_forward(x, prototypes, weight, sigma, use_bf16_mxu=False)
    out_f32 = jax.block_until_ready(out_f32)
    assert out_f32.shape == (batch_size, 1)
    assert jnp.allclose(out_f32, ref, atol=1e-5, rtol=1e-5), (out_f32, ref)

    # Fast path (bf16 MXU + bf16 prototype stream): relaxed tolerance (~1e-3 rel err).
    out_bf16 = rbf_forward(x, prototypes, weight, sigma, use_bf16_mxu=True)
    out_bf16 = jax.block_until_ready(out_bf16)
    assert out_bf16.shape == (batch_size, 1)
    assert jnp.allclose(out_bf16, ref, atol=5e-2, rtol=5e-2), (out_bf16, ref)

    print("KERNEL_OK")
</pallas_src>

<mosaic_0001>
module attributes {stable_mosaic.version = 11 : i64} {
  func.func @_rbf_kernel(%arg0: i32, %arg1: i32, %arg2: memref<8x128xf32, #tpu.memory_space<vmem>>, %arg3: memref<128x128xf32, #tpu.memory_space<vmem>>, %arg4: memref<1x128xf32, #tpu.memory_space<vmem>>, %arg5: memref<1x128xf32, #tpu.memory_space<vmem>>, %arg6: memref<8x1xf32, #tpu.memory_space<vmem>>, %arg7: memref<8x128xf32, #tpu.memory_space<vmem>>, %arg8: memref<8x1xf32, #tpu.memory_space<vmem>>) attributes {dimension_semantics = [#tpu.dimension_semantics<parallel>, #tpu.dimension_semantics<arbitrary>], iteration_bounds = array<i64: 1, 1>, scalar_prefetch = 0 : i64, scratch_operands = 2 : i64, tpu.core_type = #tpu.core_type<tc>, window_params = [{transform_indices = @transform_0, window_bounds = array<i64: 8, 128>}, {transform_indices = @transform_1, window_bounds = array<i64: 128, 128>}, {transform_indices = @transform_2, window_bounds = array<i64: 1, 128>}, {transform_indices = @transform_3, window_bounds = array<i64: 1, 128>}, {transform_indices = @transform_4, window_bounds = array<i64: 8, 1>}]} {
    %c0_i32 = arith.constant 0 : i32
    %0 = arith.cmpi eq, %arg1, %c0_i32 : i32
    %1 = arith.extui %0 : i1 to i32
    %c0_i32_0 = arith.constant 0 : i32
    %2 = arith.cmpi ne, %1, %c0_i32_0 : i32
    scf.if %2 {
      %cst_19 = arith.constant 0.000000e+00 : f32
      %29 = vector.broadcast %cst_19 : f32 to vector<8x128xf32>
      %c0_20 = arith.constant 0 : index
      %c0_21 = arith.constant 0 : index
      %30 = vector.load %arg7[%c0_20, %c0_21] : memref<8x128xf32, #tpu.memory_space<vmem>>, vector<8x128xf32>
      tpu.vector_store %arg7[%c0_20, %c0_21], %29 {strides = array<i32>} : memref<8x128xf32, #tpu.memory_space<vmem>>, vector<8x128xf32>,
      %c0_22 = arith.constant 0 : index
      %c0_23 = arith.constant 0 : index
      %31 = vector.load %arg2[%c0_22, %c0_23] : memref<8x128xf32, #tpu.memory_space<vmem>>, vector<8x128xf32>
      %32 = arith.mulf %31, %31 : vector<8x128xf32>
      %cst_24 = arith.constant dense<0.000000e+00> : vector<8xf32>
      %33 = vector.multi_reduction <add>, %32, %cst_24 [1] : vector<8x128xf32> to vector<8xf32>
      %34 = vector.shape_cast %33 : vector<8xf32> to vector<8x1xf32>
      %c0_25 = arith.constant 0 : index
      %c0_26 = arith.constant 0 : index
      %35 = vector.load %arg8[%c0_25, %c0_26] : memref<8x1xf32, #tpu.memory_space<vmem>>, vector<8x1xf32>
      tpu.vector_store %arg8[%c0_25, %c0_26], %34 {strides = array<i32>} : memref<8x1xf32, #tpu.memory_space<vmem>>, vector<8x1xf32>,
    } else {
    }
    %c0 = arith.constant 0 : index
    %c0_1 = arith.constant 0 : index
    %3 = vector.load %arg2[%c0, %c0_1] : memref<8x128xf32, #tpu.memory_space<vmem>>, vector<8x128xf32>
    %c0_2 = arith.constant 0 : index
    %c0_3 = arith.constant 0 : index
    %4 = vector.load %arg3[%c0_2, %c0_3] : memref<128x128xf32, #tpu.memory_space<vmem>>, vector<128x128xf32>
    %c0_4 = arith.constant 0 : index
    %c0_5 = arith.constant 0 : index
    %5 = vector.load %arg5[%c0_4, %c0_5] : memref<1x128xf32, #tpu.memory_space<vmem>>, vector<1x128xf32>
    %c0_6 = arith.constant 0 : index
    %c0_7 = arith.constant 0 : index
    %6 = vector.load %arg4[%c0_6, %c0_7] : memref<1x128xf32, #tpu.memory_space<vmem>>, vector<1x128xf32>
    %cst = arith.constant dense<0.000000e+00> : vector<8x128xf32>
    %7 = tpu.matmul %3, %4, %cst {dimension_numbers = #tpu.dot_dimension_numbers<[1], [1], [0], [0], [0, 0, 1, 0], [], []>} : vector<8x128xf32>, vector<128x128xf32>, vector<8x128xf32> -> vector<8x128xf32>
    %c0_8 = arith.constant 0 : index
    %c0_9 = arith.constant 0 : index
    %8 = vector.load %arg8[%c0_8, %c0_9] : memref<8x1xf32, #tpu.memory_space<vmem>>, vector<8x1xf32>
    %9 = vector.broadcast %8 : vector<8x1xf32> to vector<8x128xf32>
    %10 = vector.broadcast %6 : vector<1x128xf32> to vector<8x128xf32>
    %11 = arith.addf %9, %10 : vector<8x128xf32>
    %cst_10 = arith.constant 2.000000e+00 : f32
    %12 = vector.broadcast %cst_10 : f32 to vector<8x128xf32>
    %13 = arith.mulf %12, %7 : vector<8x128xf32>
    %14 = arith.subf %11, %13 : vector<8x128xf32>
    %cst_11 = arith.constant 0.000000e+00 : f32
    %15 = vector.broadcast %cst_11 : f32 to vector<8x128xf32>
    %16 = arith.maximumf %14, %15 : vector<8x128xf32>
    %17 = math.sqrt %16 : vector<8x128xf32>
    %cst_12 = arith.constant -0.222222224 : f32
    %18 = vector.broadcast %cst_12 : f32 to vector<8x128xf32>
    %19 = arith.mulf %17, %18 : vector<8x128xf32>
    %20 = math.exp %19 : vector<8x128xf32>
    %21 = vector.broadcast %5 : vector<1x128xf32> to vector<8x128xf32>
    %22 = arith.mulf %20, %21 : vector<8x128xf32>
    %c0_13 = arith.constant 0 : index
    %c0_14 = arith.constant 0 : index
    %23 = vector.load %arg7[%c0_13, %c0_14] : memref<8x128xf32, #tpu.memory_space<vmem>>, vector<8x128xf32>
    %24 = arith.addf %23, %22 : vector<8x128xf32>
    %c0_15 = arith.constant 0 : index
    %c0_16 = arith.constant 0 : index
    %25 = vector.load %arg7[%c0_15, %c0_16] : memref<8x128xf32, #tpu.memory_space<vmem>>, vector<8x128xf32>
    tpu.vector_store %arg7[%c0_15, %c0_16], %24 {strides = array<i32>} : memref<8x128xf32, #tpu.memory_space<vmem>>, vector<8x128xf32>,
    %c0_i32_17 = arith.constant 0 : i32
    %26 = arith.cmpi eq, %arg1, %c0_i32_17 : i32
    %27 = arith.extui %26 : i1 to i32
    %c0_i32_18 = arith.constant 0 : i32
    %28 = arith.cmpi ne, %27, %c0_i32_18 : i32
    scf.if %28 {
      %c0_19 = arith.constant 0 : index
      %c0_20 = arith.constant 0 : index
      %29 = vector.load %arg7[%c0_19, %c0_20] : memref<8x128xf32, #tpu.memory_space<vmem>>, vector<8x128xf32>
      %cst_21 = arith.constant dense<0.000000e+00> : vector<8xf32>
      %30 = vector.multi_reduction <add>, %29, %cst_21 [1] : vector<8x128xf32> to vector<8xf32>
      %31 = vector.shape_cast %30 : vector<8xf32> to vector<8x1xf32>
      %c0_22 = arith.constant 0 : index
      %c0_23 = arith.constant 0 : index
      %32 = vector.load %arg6[%c0_22, %c0_23] : memref<8x1xf32, #tpu.memory_space<vmem>>, vector<8x1xf32>
      tpu.vector_store %arg6[%c0_22, %c0_23], %31 {strides = array<i32>} : memref<8x1xf32, #tpu.memory_space<vmem>>, vector<8x1xf32>,
    } else {
    }
    return
  }
  func.func @transform_0(%arg0: i32, %arg1: i32) -> (i32, i32) {
    %c0_i32 = arith.constant 0 : i32
    %c0_i32_0 = arith.constant 0 : i32
    return %arg0, %c0_i32 : i32, i32
  }
  func.func @transform_1(%arg0: i32, %arg1: i32) -> (i32, i32) {
    %c0_i32 = arith.constant 0 : i32
    %c0_i32_0 = arith.constant 0 : i32
    return %arg1, %c0_i32 : i32, i32
  }
  func.func @transform_2(%arg0: i32, %arg1: i32) -> (i32, i32) {
    %c0_i32 = arith.constant 0 : i32
    %c0_i32_0 = arith.constant 0 : i32
    return %c0_i32, %arg1 : i32, i32
  }
  func.func @transform_3(%arg0: i32, %arg1: i32) -> (i32, i32) {
    %c0_i32 = arith.constant 0 : i32
    %c0_i32_0 = arith.constant 0 : i32
    return %c0_i32, %arg1 : i32, i32
  }
  func.func @transform_4(%arg0: i32, %arg1: i32) -> (i32, i32) {
    %c0_i32 = arith.constant 0 : i32
    %c0_i32_0 = arith.constant 0 : i32
    return %arg0, %c0_i32 : i32, i32
  }
}

</mosaic_0001>

<bundles_post_ra>
// kernel: tpu_custom_call.1
= control target key start
LH: loop header
LB: loop body
LE: loop exit
PB: predicated region body
PF: predicated region fallthrough
CT: control target
= control target key end

     0   :  { %9 = vsyncpa [#allocation5], 0  ;;  %s352_s0 = inlined_call_operand.hbm [shape: f32[8,128], index: 0, kind: input, shape index: {}]   ;;  %s353_s1 = inlined_call_operand.hbm [shape: f32[128,128], index: 1, kind: input, shape index: {}]   ;;  %s354_s2 = inlined_call_operand.vmem [shape: f32[1,128], index: 2, kind: input, shape index: {}]   ;;  %s355_s3 = inlined_call_operand.vmem [shape: f32[1,128], index: 3, kind: input, shape index: {}]   ;;  %s356_s4 = inlined_call_operand.vmem [shape: f32[8,1], index: 4, kind: output, shape index: {}]  }
   0x1   :  { %10 = vsyncpa [#allocation7], 0  ;;  %s303_s15 = smov [#allocation4]   ;;  %s304_s17 = smov [#allocation6]  }
   0x2   :  { %s17_s16 = sshll.u32 %s303_s15, 4  ;;  %s26_s18 = sshll.u32 %s304_s17, 4  ;;  %s18_s16 = int_to_ptr.vmem [resolvable:$true] %s17_s16  ;;  %s27_s18 = int_to_ptr.vmem [resolvable:$true] %s26_s18 }
   0x3   :  { %s267_s19 = scalar_lea.vmem %s18_s16, 128  ;;  %p272_p1 = scmp.lt.s32.totalorder %s18_s16, %s18_s16 }
   0x4   :  { %p268_p0 = scmp.ne.s32.totalorder %s18_s16, %s267_s19  ;;  %p273_p2 = scmp.lt.s32.totalorder %s267_s19, %s267_s19 }
   0x6   :  { %p274_p3 = por %p273_p2, %p272_p1 }
   0x8   :  { %p275_p4 = pnand %p274_p3, %p268_p0 }
   0xa   :  { %278 = shalt.err (!%p275_p4)
}
   0xb   :  { %20 = dma.hbm_to_vmem [thread:$0]  %s352_s0, 128, %s18_s16, [#allocation5]  }
   0xc   :  { %s287_s22 = scalar_lea.vmem %s27_s18, 2048  ;;  %p292_p6 = scmp.lt.s32.totalorder %s27_s18, %s27_s18 }
   0xd   :  { %p288_p5 = scmp.ne.s32.totalorder %s27_s18, %s287_s22  ;;  %p293_p7 = scmp.lt.s32.totalorder %s287_s22, %s287_s22 }
   0xf   :  { %p294_p8 = por %p293_p7, %p292_p6 }
  0x11   :  { %p295_p9 = pnand %p294_p8, %p288_p5 }
  0x13   :  { %298 = shalt.err (!%p295_p9)
}
  0x14   :  { %s305_s23 = smov 128   ;;  %s306_s24 = smov 8  }
  0x15   :  { %32 = dma.hbm_to_vmem [thread:$0]  %s353_s1, 2048, %s27_s18, [#allocation7], %s305_s23, %s305_s23, %s306_s24  }
  0x16   :  { %299 = dma.done.wait [#allocation5], 128  }
  0x17   :  { %300 = vsyncadd [#allocation5], 4294967168 }
  0x18   :  { %301 = dma.done.wait [#allocation7], 2048  }
  0x19   :  { %302 = vsyncadd [#allocation7], 4294965248  ;;  %v307_v0 = vmov 0.0   ;;  %vm308_vm0 = vmmov 0   ;;  %v48_v1 = vld [vmem:[#allocation4] sm:$0xff]  ;;  %v69_v4 = vld [vmem:[#allocation6 + $0x70] sm:$0xff] }
  0x1a   :  { %212 = vmatprep.subr.mxu0 %v307_v0  ;;  %244 = vmatprep.mubr.msk.f32.mxu0 %vm308_vm0, %v307_v0  ;;  %v70_v2 = vld [vmem:[#allocation6 + $0x78] sm:$0xff]  ;;  %v49_v3 = vmul.f32 %v48_v1, %v48_v1  ;;  %v68_v5 = vld [vmem:[#allocation6 + $0x68] sm:$0xff]  ;;  %v67_v6 = vld [vmem:[#allocation6 + $0x60] sm:$0xff]  ;;  %v309_v8 = vmov 0   ;;  %vm52_vm1 = vcmask 7168  }
  0x1b   :  { %213 = vmatpush3.xpose.msra.mxu0 %v70_v2  ;;  %v66_v7 = vld [vmem:[#allocation6 + $0x58] sm:$0xff]  ;;  %254 = vset.pattern.permute.xlu0 %v309_v8  ;;  %v65_v9 = vld [vmem:[#allocation6 + $0x50] sm:$0xff]  ;;  %v64_v10 = vld [vmem:[#allocation6 + $0x48] sm:$0xff] }
  0x1c   :  { %214 = vmatprep.subr.mxu0 %v307_v0  ;;  %50 = vadd.xlane.f32.xlu0 %v49_v3  ;;  %v63_v11 = vld [vmem:[#allocation6 + $0x40] sm:$0xff]  ;;  %v62_v12 = vld [vmem:[#allocation6 + $0x38] sm:$0xff]  ;;  %v61_v13 = vld [vmem:[#allocation6 + $0x30] sm:$0xff] }
  0x1d   :  { %v60_v14 = vld [vmem:[#allocation6 + $0x28] sm:$0xff]  ;;  %v59_v15 = vld [vmem:[#allocation6 + $0x20] sm:$0xff]  ;;  %v58_v16 = vld [vmem:[#allocation6 + $0x18] sm:$0xff] }
  0x1e   :  { %v57_v17 = vld [vmem:[#allocation6 + $0x10] sm:$0xff]  ;;  %v56_v18 = vld [vmem:[#allocation6 + $0x8] sm:$0xff]  ;;  %v55_v19 = vld [vmem:[#allocation6] sm:$0xff] }
  0x1f   :  { %215 = vmatpush3.xpose.msra.mxu0 %v69_v4  ;;  %v193_v24 = vld [vmem:[%s354_s2] ss:$0 sm:$0xff] }
  0x20   :  { %216 = vmatprep.subr.mxu0 %v307_v0  ;;  %v194_v37 = vld [vmem:[%s355_s3] ss:$0 sm:$0xff] }
  0x23   :  { %217 = vmatpush3.xpose.msra.mxu0 %v68_v5 }
  0x24   :  { %218 = vmatprep.subr.mxu0 %v307_v0 }
  0x27   :  { %219 = vmatpush3.xpose.msra.mxu0 %v67_v6 }
  0x28   :  { %220 = vmatprep.subr.mxu0 %v307_v0 }
  0x2b   :  { %221 = vmatpush3.xpose.msra.mxu0 %v66_v7 }
  0x2c   :  { %222 = vmatprep.subr.mxu0 %v307_v0 }
  0x2f   :  { %223 = vmatpush3.xpose.msra.mxu0 %v65_v9 }
  0x30   :  { %224 = vmatprep.subr.mxu0 %v307_v0 }
  0x33   :  { %225 = vmatpush3.xpose.msra.mxu0 %v64_v10 }
  0x34   :  { %226 = vmatprep.subr.mxu0 %v307_v0 }
  0x37   :  { %227 = vmatpush3.xpose.msra.mxu0 %v63_v11 }
  0x38   :  { %228 = vmatprep.subr.mxu0 %v307_v0 }
  0x3b   :  { %229 = vmatpush3.xpose.msra.mxu0 %v62_v12 }
  0x3c   :  { %230 = vmatprep.subr.mxu0 %v307_v0 }
  0x3f   :  { %231 = vmatpush3.xpose.msra.mxu0 %v61_v13 }
  0x40   :  { %232 = vmatprep.subr.mxu0 %v307_v0 }
  0x43   :  { %233 = vmatpush3.xpose.msra.mxu0 %v60_v14 }
  0x44   :  { %234 = vmatprep.subr.mxu0 %v307_v0 }
  0x47   :  { %235 = vmatpush3.xpose.msra.mxu0 %v59_v15 }
  0x48   :  { %236 = vmatprep.subr.mxu0 %v307_v0 }
  0x4b   :  { %237 = vmatpush3.xpose.msra.mxu0 %v58_v16 }
  0x4c   :  { %238 = vmatprep.subr.mxu0 %v307_v0 }
  0x4f   :  { %239 = vmatpush3.xpose.msra.mxu0 %v57_v17 }
  0x50   :  { %240 = vmatprep.subr.mxu0 %v307_v0 }
  0x53   :  { %241 = vmatpush3.xpose.msra.mxu0 %v56_v18 }
  0x54   :  { %242 = vmatprep.subr.mxu0 %v307_v0 }
  0x57   :  { %243 = vmatpush3.xpose.msra.mxu0 %v55_v19 }
  0x5a   :  { %245 = vmatmul.mubr.f32.vlgmr.msra.gmra.mxu0 %v48_v1 }
  0xa5   :  { %v51_v20 = vpop.xlane.xlu0 %50 }
  0xa6   :  { %53 = vst.msk [vmem:[#allocation3] sm:$0xff] %vm52_vm1, %v51_v20 }
  0xad   :  { %v143_v21 = vld [vmem:[#allocation3] sm:$0xff] }
  0xae   :  { %146 = vperm.xlu0 %254, %v143_v21  }
 0x11a   :  { %v139_v22 = vpop.f32.mrf.mxu0 }
 0x11b   :  { %v156_v25 = vmul.f32 2.0, %v139_v22 }
 0x11c   :  { %v246_v23 = vpop.f32.mrf.mxu0 }
 0x129   :  { %v147_v26 = vpop.permute.xlu0 %146 }
 0x12a   :  { %v155_v27 = vadd.f32 %v193_v24, %v147_v26 }
 0x12c   :  { %v157_v28 = vsub.f32 %v155_v27, %v156_v25 }
 0x12e   :  { %v158_v29 = vmax.f32 %v157_v28, 0.0 }
 0x130   :  { %255 = vrsqrt.f32 %v158_v29  ;;  %vm161_vm2 = vcmp.eq.f32.partialorder %v158_v29, inf  ;;  %v164_v32 = vand.u32 2147483648, %v158_v29  ;;  %vm163_vm3 = vcmp.eq.f32.partialorder %v158_v29, 0.0 }
 0x13d   :  { %v256_v30 = vpop.eup %255 }
 0x13e   :  { %v160_v31 = vmul.f32 %v256_v30, %v158_v29 }
 0x140   :  { %v162_v33 = vsel %vm161_vm2, %v158_v29, %v160_v31 }
 0x141   :  { %v165_v34 = vsel %vm163_vm3, %v164_v32, %v162_v33 }
 0x142   :  { %v166_v35 = vmul.f32 -0.22222222, %v165_v34 }
 0x144   :  { %v167_v36 = vmul.f32 1.442695, %v166_v35 }
 0x146   :  { %257 = vpow2.f32 %v167_v36 }
 0x153   :  { %v258_v38 = vpop.eup %257 }
 0x154   :  { %v175_v39 = vmul.f32 %v258_v38, %v194_v37 }
 0x156   :  { %183 = vadd.xlane.f32.xlu1 %v175_v39 }
 0x1df   :  { %v184_v40 = vpop.xlane.xlu1 %183 }
 0x1e0   :  { %186 = vst.msk [vmem:[%s356_s4] sm:$0xff] %vm52_vm1, %v184_v40 }
 0x1e1   :  { %191 = vsyncpa [#allocation5], 1 }
 0x1e2   :  { %192 = vsyncpa [#allocation7], 1 }

</bundles_post_ra>
